<compile_context>
chip_gen: v6e
topology: v6e:2x2x1
jax: 0.10.0
libtpu: 0.0.40
codegen_flags: <defaults>
</compile_context>

<pallas_src>
import jax
import jax.numpy as jnp
from jax import lax
from jax.experimental import pallas as pl
from jax.experimental.pallas import tpu as pltpu


# ----------------------------- Pallas kernel ------------------------------ #
def _pwca_adj_kernel(k_ref, s_ref, w1t_ref, b1_ref, w2t_ref, b2_ref,
                     wadj_ref, badj_ref, o_ref):
    # k_ref: (bb, C, Nz) bf16   s_ref: (bb, C, Nx) bf16
    # w1t/w2t: (Nz, Nz) bf16 (pre-transposed 1x1-conv weights)
    # b1/b2:   (1, Nz)  f32    wadj: (adj, Nz) bf16   badj: (adj, 1) f32
    f32 = jnp.float32
    nx = s_ref.shape[-1]
    inv_nx = 1.0 / nx

    # Hoist shared weight loads out of the batch loop.
    w1t = w1t_ref[...]
    b1 = b1_ref[...]
    w2t = w2t_ref[...]
    b2 = b2_ref[...]
    wadj = wadj_ref[...]
    badj = badj_ref[...]
    mxu_dt = w1t.dtype

    # Static (unrolled) loop over the batch rows inside this block.
    for b in range(k_ref.shape[0]):
        k = k_ref[b]                                  # (C, Nz) bf16
        s = s_ref[b]                                  # (C, Nx) bf16

        # pooled[z] = mean_x corr[z, x] = (1/Nx) * sum_c k[c, z] * (sum_x s[c, x])
        s_sum = jnp.sum(s.astype(f32), axis=1, keepdims=True)            # (C, 1) f32
        pooled = lax.dot_general(
            s_sum.astype(mxu_dt), k, (((0,), (0,)), ((), ())),
            preferred_element_type=f32) * inv_nx                          # (1, Nz) f32

        # CAModule (reduction=1), lane-major row layout.
        h = jnp.maximum(
            jnp.dot(pooled.astype(mxu_dt), w1t, preferred_element_type=f32) + b1,
            0.0)                                                          # (1, Nz) f32
        a = jax.nn.sigmoid(
            jnp.dot(h.astype(mxu_dt), w2t, preferred_element_type=f32) + b2)  # (1, Nz)

        # Fold channel attention + adjust 1x1 conv:
        #   out = wadj @ (a * corr) + badj = ((wadj * a) @ k^T) @ s + badj
        wadj_a = (wadj.astype(f32) * a).astype(mxu_dt)                    # (adj, Nz)
        tmp = lax.dot_general(wadj_a, k, (((1,), (1,)), ((), ())),
                              preferred_element_type=f32)                 # (adj, C) f32
        out = jnp.dot(tmp.astype(mxu_dt), s,
                      preferred_element_type=f32) + badj                  # (adj, Nx)
        o_ref[b] = out.astype(o_ref.dtype)


# ------------------------------ JAX wrapper -------------------------------- #
def pwca_adj_forward(kernel, search, prep_params, *, fold_batch=True):
    """One branch (one stride_idx) of Point_Neck_Mobile_simple_DP.forward."""
    B, C, Hz, Wz = kernel.shape
    Bs, Cs, Hx, Wx = search.shape
    assert (B, C) == (Bs, Cs)
    Nz = Hz * Wz
    Nx = Hx * Wx
    w1t, b1, w2t, b2, wadj, badj = prep_params
    assert w1t.shape == (Nz, Nz), "num_kernel must equal kernel spatial size"
    adj = wadj.shape[0]

    mxu_dt = w1t.dtype
    kf = kernel.reshape(B, C, Nz).astype(mxu_dt)   # bf16 storage halves DMA bytes
    sf = search.reshape(B, C, Nx).astype(mxu_dt)

    # fold_batch=True : single grid step, unrolled loop over B inside the kernel
    #                   (best on single-TensorCore chips: no per-step overhead).
    # fold_batch=False: grid=(B,) with "parallel" semantics so Mosaic can shard
    #                   batches across TensorCores (multi-TC chips, e.g. v7x).
    bb = B if fold_batch else 1
    dim_sem = ("arbitrary",) if fold_batch else ("parallel",)

    out_flat = pl.pallas_call(
        _pwca_adj_kernel,
        out_shape=jax.ShapeDtypeStruct((B, adj, Nx), jnp.float32),
        grid_spec=pltpu.PrefetchScalarGridSpec(
            num_scalar_prefetch=0,
            grid=(pl.cdiv(B, bb),),
            in_specs=[
                pl.BlockSpec((bb, C, Nz), lambda i: (i, 0, 0)),
                pl.BlockSpec((bb, C, Nx), lambda i: (i, 0, 0)),
                pl.BlockSpec((Nz, Nz), lambda i: (0, 0)),
                pl.BlockSpec((1, Nz), lambda i: (0, 0)),
                pl.BlockSpec((Nz, Nz), lambda i: (0, 0)),
                pl.BlockSpec((1, Nz), lambda i: (0, 0)),
                pl.BlockSpec((adj, Nz), lambda i: (0, 0)),
                pl.BlockSpec((adj, 1), lambda i: (0, 0)),
            ],
            out_specs=pl.BlockSpec((bb, adj, Nx), lambda i: (i, 0, 0)),
        ),
        compiler_params=pltpu.CompilerParams(dimension_semantics=dim_sem),
    )(kf, sf, w1t, b1, w2t, b2, wadj, badj)

    return out_flat.reshape(B, adj, Hx, Wx)


def point_neck_forward(all_params, kernel, search, stride_idx, fold_batch=True):
    """Mirrors Point_Neck_Mobile_simple_DP.forward (stride_idx selects branch)."""
    corr_feat = pwca_adj_forward(kernel, search, all_params[stride_idx],
                                 fold_batch=fold_batch)
    return {"cls": corr_feat, "reg": corr_feat}


def _prefer_parallel_batch_grid():
    """True on multi-TensorCore chips (shard batch grid across cores); False on
    single-TC chips (v5e/v6e), where folding the batch into one step is better."""
    try:
        kind = jax.devices()[0].device_kind.lower()
    except Exception:
        return False
    return any(tag in kind for tag in ("v7", "v4", "v5p"))


# --------------------------- parameter creation ----------------------------- #
def init_branch_params(key, num_kernel, adj_channel=128):
    """Raw PyTorch-layout parameters (1x1 conv weights as (out, in))."""
    ks = jax.random.split(key, 6)
    scale = 0.05
    w1 = scale * jax.random.normal(ks[0], (num_kernel, num_kernel), jnp.float32)
    b1 = scale * jax.random.normal(ks[1], (num_kernel,), jnp.float32)
    w2 = scale * jax.random.normal(ks[2], (num_kernel, num_kernel), jnp.float32)
    b2 = scale * jax.random.normal(ks[3], (num_kernel,), jnp.float32)
    wadj = scale * jax.random.normal(ks[4], (adj_channel, num_kernel), jnp.float32)
    badj = scale * jax.random.normal(ks[5], (adj_channel,), jnp.float32)
    return (w1, b1, w2, b2, wadj, badj)


def prepare_branch_params(raw, mxu_dtype=jnp.bfloat16):
    """One-time prep hoisted out of the per-call wrapper: transpose 1x1-conv
    weights for lane-major matmuls, reshape biases, store big operands as bf16."""
    w1, b1, w2, b2, wadj, badj = raw
    nz = w1.shape[0]
    adj = wadj.shape[0]
    return (jnp.asarray(w1.T, mxu_dtype),
            jnp.asarray(b1, jnp.float32).reshape(1, nz),
            jnp.asarray(w2.T, mxu_dtype),
            jnp.asarray(b2, jnp.float32).reshape(1, nz),
            jnp.asarray(wadj, mxu_dtype),
            jnp.asarray(badj, jnp.float32).reshape(adj, 1))


# ----------------------------- pure-JAX reference --------------------------- #
def ref_forward(kernel, search, params):
    B, C, Hz, Wz = kernel.shape
    _, _, Hx, Wx = search.shape
    w1, b1, w2, b2, wadj, badj = params
    z = kernel.reshape(B, C, -1)
    x = search.reshape(B, C, -1)
    corr = jnp.einsum("bcz,bcx->bzx", z, x)                    # (B, Nz, Nx)
    pooled = corr.mean(axis=2)                                 # (B, Nz)
    h = jnp.maximum(pooled @ w1.T + b1, 0.0)
    a = jax.nn.sigmoid(h @ w2.T + b2)
    attn = corr * a[:, :, None]
    out = jnp.einsum("oz,bzx->box", wadj, attn) + badj[None, :, None]
    return out.reshape(B, -1, Hx, Wx)


# ---------------------------------- main ------------------------------------ #
if __name__ == "__main__":
    key = jax.random.PRNGKey(0)
    k_p0, k_p1, k_in = jax.random.split(key, 3)

    num_kernel_list = (256, 64)     # module default: stride 8 -> 256, stride 16 -> 64
    adj_channel = 128
    raw_params = (
        init_branch_params(k_p0, num_kernel_list[0], adj_channel),
        init_branch_params(k_p1, num_kernel_list[1], adj_channel),
    )
    # Hoisted one-time prep (transpose / reshape / bf16 cast) -- not per call.
    prep_params = tuple(prepare_branch_params(p) for p in raw_params)

    fold_batch = not _prefer_parallel_batch_grid()

    B, C = 2, 16
    kk1, kk2, kk3, kk4 = jax.random.split(k_in, 4)

    # stride_idx = 1  (num_kernel = 64  -> kernel spatial 8x8,  search 16x16)
    kernel1 = jax.random.normal(kk1, (B, C, 8, 8), jnp.float32)
    search1 = jax.random.normal(kk2, (B, C, 16, 16), jnp.float32)
    oup1 = point_neck_forward(prep_params, kernel1, search1, 1, fold_batch)
    jax.block_until_ready(oup1["cls"])

    # stride_idx = 0  (num_kernel = 256 -> kernel spatial 16x16, search 16x16)
    kernel0 = jax.random.normal(kk3, (B, C, 16, 16), jnp.float32)
    search0 = jax.random.normal(kk4, (B, C, 16, 16), jnp.float32)
    oup0 = point_neck_forward(prep_params, kernel0, search0, 0, fold_batch)
    jax.block_until_ready(oup0["cls"])

    # correctness vs. pure-f32 reference (bf16 operand storage -> loosened tol)
    ref1 = ref_forward(kernel1, search1, raw_params[1])
    ref0 = ref_forward(kernel0, search0, raw_params[0])
    assert oup1["cls"].shape == (B, adj_channel, 16, 16)
    assert oup0["cls"].shape == (B, adj_channel, 16, 16)
    tol = dict(rtol=5e-2, atol=5e-2)
    assert jnp.allclose(oup1["cls"], ref1, **tol)
    assert jnp.allclose(oup1["reg"], ref1, **tol)
    assert jnp.allclose(oup0["cls"], ref0, **tol)

    print("KERNEL_OK")
</pallas_src>

<mosaic_0001>
module attributes {stable_mosaic.version = 11 : i64} {
  func.func @_pwca_adj_kernel(%arg0: i32, %arg1: memref<2x16x64xbf16, #tpu.memory_space<vmem>>, %arg2: memref<2x16x256xbf16, #tpu.memory_space<vmem>>, %arg3: memref<64x64xbf16, #tpu.memory_space<vmem>>, %arg4: memref<1x64xf32, #tpu.memory_space<vmem>>, %arg5: memref<64x64xbf16, #tpu.memory_space<vmem>>, %arg6: memref<1x64xf32, #tpu.memory_space<vmem>>, %arg7: memref<128x64xbf16, #tpu.memory_space<vmem>>, %arg8: memref<128x1xf32, #tpu.memory_space<vmem>>, %arg9: memref<2x128x256xf32, #tpu.memory_space<vmem>>) attributes {dimension_semantics = [#tpu.dimension_semantics<arbitrary>], iteration_bounds = array<i64: 1>, scalar_prefetch = 0 : i64, scratch_operands = 0 : i64, tpu.core_type = #tpu.core_type<tc>, window_params = [{transform_indices = @transform_0, window_bounds = array<i64: 2, 16, 64>}, {transform_indices = @transform_1, window_bounds = array<i64: 2, 16, 256>}, {pipeline_mode = #tpu.pipeline_mode<synchronous>, transform_indices = @transform_2, window_bounds = array<i64: 64, 64>}, {pipeline_mode = #tpu.pipeline_mode<synchronous>, transform_indices = @transform_3, window_bounds = array<i64: 1, 64>}, {pipeline_mode = #tpu.pipeline_mode<synchronous>, transform_indices = @transform_4, window_bounds = array<i64: 64, 64>}, {pipeline_mode = #tpu.pipeline_mode<synchronous>, transform_indices = @transform_5, window_bounds = array<i64: 1, 64>}, {pipeline_mode = #tpu.pipeline_mode<synchronous>, transform_indices = @transform_6, window_bounds = array<i64: 128, 64>}, {pipeline_mode = #tpu.pipeline_mode<synchronous>, transform_indices = @transform_7, window_bounds = array<i64: 128, 1>}, {transform_indices = @transform_8, window_bounds = array<i64: 2, 128, 256>}]} {
    %c0 = arith.constant 0 : index
    %c0_0 = arith.constant 0 : index
    %0 = vector.load %arg3[%c0, %c0_0] : memref<64x64xbf16, #tpu.memory_space<vmem>>, vector<64x64xbf16>
    %c0_1 = arith.constant 0 : index
    %c0_2 = arith.constant 0 : index
    %1 = vector.load %arg4[%c0_1, %c0_2] : memref<1x64xf32, #tpu.memory_space<vmem>>, vector<1x64xf32>
    %c0_3 = arith.constant 0 : index
    %c0_4 = arith.constant 0 : index
    %2 = vector.load %arg5[%c0_3, %c0_4] : memref<64x64xbf16, #tpu.memory_space<vmem>>, vector<64x64xbf16>
    %c0_5 = arith.constant 0 : index
    %c0_6 = arith.constant 0 : index
    %3 = vector.load %arg6[%c0_5, %c0_6] : memref<1x64xf32, #tpu.memory_space<vmem>>, vector<1x64xf32>
    %c0_7 = arith.constant 0 : index
    %c0_8 = arith.constant 0 : index
    %4 = vector.load %arg7[%c0_7, %c0_8] : memref<128x64xbf16, #tpu.memory_space<vmem>>, vector<128x64xbf16>
    %c0_9 = arith.constant 0 : index
    %c0_10 = arith.constant 0 : index
    %5 = vector.load %arg8[%c0_9, %c0_10] : memref<128x1xf32, #tpu.memory_space<vmem>>, vector<128x1xf32>
    %c0_11 = arith.constant 0 : index
    %c0_12 = arith.constant 0 : index
    %c0_13 = arith.constant 0 : index
    %6 = vector.load %arg1[%c0_11, %c0_12, %c0_13] : memref<2x16x64xbf16, #tpu.memory_space<vmem>>, vector<1x16x64xbf16>
    %7 = vector.shape_cast %6 : vector<1x16x64xbf16> to vector<16x64xbf16>
    %c0_14 = arith.constant 0 : index
    %c0_15 = arith.constant 0 : index
    %c0_16 = arith.constant 0 : index
    %8 = vector.load %arg2[%c0_14, %c0_15, %c0_16] : memref<2x16x256xbf16, #tpu.memory_space<vmem>>, vector<1x16x256xbf16>
    %9 = vector.shape_cast %8 : vector<1x16x256xbf16> to vector<16x256xbf16>
    %10 = arith.extf %9 : vector<16x256xbf16> to vector<16x256xf32>
    %cst = arith.constant dense<0.000000e+00> : vector<16xf32>
    %11 = vector.multi_reduction <add>, %10, %cst [1] : vector<16x256xf32> to vector<16xf32>
    %12 = vector.shape_cast %11 : vector<16xf32> to vector<16x1xf32>
    %13 = arith.truncf %12 : vector<16x1xf32> to vector<16x1xbf16>
    %cst_17 = arith.constant dense<0.000000e+00> : vector<1x64xf32>
    %14 = tpu.matmul %13, %7, %cst_17 {dimension_numbers = #tpu.dot_dimension_numbers<[0], [0], [1], [1], [0, 1, 1, 1], [], []>} : vector<16x1xbf16>, vector<16x64xbf16>, vector<1x64xf32> -> vector<1x64xf32>
    %cst_18 = arith.constant 3.906250e-03 : f32
    %15 = vector.broadcast %cst_18 : f32 to vector<1x64xf32>
    %16 = arith.mulf %14, %15 : vector<1x64xf32>
    %17 = arith.truncf %16 : vector<1x64xf32> to vector<1x64xbf16>
    %cst_19 = arith.constant dense<0.000000e+00> : vector<1x64xf32>
    %18 = tpu.matmul %17, %0, %cst_19 {dimension_numbers = #tpu.dot_dimension_numbers<[1], [0], [0], [1], [0, 0, 1, 1], [], []>} : vector<1x64xbf16>, vector<64x64xbf16>, vector<1x64xf32> -> vector<1x64xf32>
    %19 = arith.addf %18, %1 : vector<1x64xf32>
    %cst_20 = arith.constant 0.000000e+00 : f32
    %20 = vector.broadcast %cst_20 : f32 to vector<1x64xf32>
    %21 = arith.maximumf %19, %20 : vector<1x64xf32>
    %22 = arith.truncf %21 : vector<1x64xf32> to vector<1x64xbf16>
    %cst_21 = arith.constant dense<0.000000e+00> : vector<1x64xf32>
    %23 = tpu.matmul %22, %2, %cst_21 {dimension_numbers = #tpu.dot_dimension_numbers<[1], [0], [0], [1], [0, 0, 1, 1], [], []>} : vector<1x64xbf16>, vector<64x64xbf16>, vector<1x64xf32> -> vector<1x64xf32>
    %24 = arith.addf %23, %3 : vector<1x64xf32>
    %25 = arith.negf %24 : vector<1x64xf32>
    %26 = math.exp %25 : vector<1x64xf32>
    %cst_22 = arith.constant 1.000000e+00 : f32
    %27 = vector.broadcast %cst_22 : f32 to vector<1x64xf32>
    %28 = arith.addf %27, %26 : vector<1x64xf32>
    %29 = arith.divf %27, %28 : vector<1x64xf32>
    %30 = arith.extf %4 : vector<128x64xbf16> to vector<128x64xf32>
    %31 = vector.broadcast %29 : vector<1x64xf32> to vector<128x64xf32>
    %32 = arith.mulf %30, %31 : vector<128x64xf32>
    %33 = arith.truncf %32 : vector<128x64xf32> to vector<128x64xbf16>
    %cst_23 = arith.constant dense<0.000000e+00> : vector<128x16xf32>
    %34 = tpu.matmul %33, %7, %cst_23 {dimension_numbers = #tpu.dot_dimension_numbers<[1], [1], [0], [0], [0, 0, 1, 0], [], []>} : vector<128x64xbf16>, vector<16x64xbf16>, vector<128x16xf32> -> vector<128x16xf32>
    %35 = arith.truncf %34 : vector<128x16xf32> to vector<128x16xbf16>
    %cst_24 = arith.constant dense<0.000000e+00> : vector<128x256xf32>
    %36 = tpu.matmul %35, %9, %cst_24 {dimension_numbers = #tpu.dot_dimension_numbers<[1], [0], [0], [1], [0, 0, 1, 1], [], []>} : vector<128x16xbf16>, vector<16x256xbf16>, vector<128x256xf32> -> vector<128x256xf32>
    %37 = vector.broadcast %5 : vector<128x1xf32> to vector<128x256xf32>
    %38 = arith.addf %36, %37 : vector<128x256xf32>
    %c0_25 = arith.constant 0 : index
    %c0_26 = arith.constant 0 : index
    %c0_27 = arith.constant 0 : index
    %39 = vector.load %arg9[%c0_25, %c0_26, %c0_27] : memref<2x128x256xf32, #tpu.memory_space<vmem>>, vector<1x128x256xf32>
    %40 = vector.shape_cast %39 : vector<1x128x256xf32> to vector<128x256xf32>
    %41 = vector.shape_cast %38 : vector<128x256xf32> to vector<1x128x256xf32>
    tpu.vector_store %arg9[%c0_25, %c0_26, %c0_27], %41 {strides = array<i32>} : memref<2x128x256xf32, #tpu.memory_space<vmem>>, vector<1x128x256xf32>,
    %c1 = arith.constant 1 : index
    %c0_28 = arith.constant 0 : index
    %c0_29 = arith.constant 0 : index
    %42 = vector.load %arg1[%c1, %c0_28, %c0_29] : memref<2x16x64xbf16, #tpu.memory_space<vmem>>, vector<1x16x64xbf16>
    %43 = vector.shape_cast %42 : vector<1x16x64xbf16> to vector<16x64xbf16>
    %c1_30 = arith.constant 1 : index
    %c0_31 = arith.constant 0 : index
    %c0_32 = arith.constant 0 : index
    %44 = vector.load %arg2[%c1_30, %c0_31, %c0_32] : memref<2x16x256xbf16, #tpu.memory_space<vmem>>, vector<1x16x256xbf16>
    %45 = vector.shape_cast %44 : vector<1x16x256xbf16> to vector<16x256xbf16>
    %46 = arith.extf %45 : vector<16x256xbf16> to vector<16x256xf32>
    %cst_33 = arith.constant dense<0.000000e+00> : vector<16xf32>
    %47 = vector.multi_reduction <add>, %46, %cst_33 [1] : vector<16x256xf32> to vector<16xf32>
    %48 = vector.shape_cast %47 : vector<16xf32> to vector<16x1xf32>
    %49 = arith.truncf %48 : vector<16x1xf32> to vector<16x1xbf16>
    %cst_34 = arith.constant dense<0.000000e+00> : vector<1x64xf32>
    %50 = tpu.matmul %49, %43, %cst_34 {dimension_numbers = #tpu.dot_dimension_numbers<[0], [0], [1], [1], [0, 1, 1, 1], [], []>} : vector<16x1xbf16>, vector<16x64xbf16>, vector<1x64xf32> -> vector<1x64xf32>
    %cst_35 = arith.constant 3.906250e-03 : f32
    %51 = vector.broadcast %cst_35 : f32 to vector<1x64xf32>
    %52 = arith.mulf %50, %51 : vector<1x64xf32>
    %53 = arith.truncf %52 : vector<1x64xf32> to vector<1x64xbf16>
    %cst_36 = arith.constant dense<0.000000e+00> : vector<1x64xf32>
    %54 = tpu.matmul %53, %0, %cst_36 {dimension_numbers = #tpu.dot_dimension_numbers<[1], [0], [0], [1], [0, 0, 1, 1], [], []>} : vector<1x64xbf16>, vector<64x64xbf16>, vector<1x64xf32> -> vector<1x64xf32>
    %55 = arith.addf %54, %1 : vector<1x64xf32>
    %cst_37 = arith.constant 0.000000e+00 : f32
    %56 = vector.broadcast %cst_37 : f32 to vector<1x64xf32>
    %57 = arith.maximumf %55, %56 : vector<1x64xf32>
    %58 = arith.truncf %57 : vector<1x64xf32> to vector<1x64xbf16>
    %cst_38 = arith.constant dense<0.000000e+00> : vector<1x64xf32>
    %59 = tpu.matmul %58, %2, %cst_38 {dimension_numbers = #tpu.dot_dimension_numbers<[1], [0], [0], [1], [0, 0, 1, 1], [], []>} : vector<1x64xbf16>, vector<64x64xbf16>, vector<1x64xf32> -> vector<1x64xf32>
    %60 = arith.addf %59, %3 : vector<1x64xf32>
    %61 = arith.negf %60 : vector<1x64xf32>
    %62 = math.exp %61 : vector<1x64xf32>
    %cst_39 = arith.constant 1.000000e+00 : f32
    %63 = vector.broadcast %cst_39 : f32 to vector<1x64xf32>
    %64 = arith.addf %63, %62 : vector<1x64xf32>
    %65 = arith.divf %63, %64 : vector<1x64xf32>
    %66 = arith.extf %4 : vector<128x64xbf16> to vector<128x64xf32>
    %67 = vector.broadcast %65 : vector<1x64xf32> to vector<128x64xf32>
    %68 = arith.mulf %66, %67 : vector<128x64xf32>
    %69 = arith.truncf %68 : vector<128x64xf32> to vector<128x64xbf16>
    %cst_40 = arith.constant dense<0.000000e+00> : vector<128x16xf32>
    %70 = tpu.matmul %69, %43, %cst_40 {dimension_numbers = #tpu.dot_dimension_numbers<[1], [1], [0], [0], [0, 0, 1, 0], [], []>} : vector<128x64xbf16>, vector<16x64xbf16>, vector<128x16xf32> -> vector<128x16xf32>
    %71 = arith.truncf %70 : vector<128x16xf32> to vector<128x16xbf16>
    %cst_41 = arith.constant dense<0.000000e+00> : vector<128x256xf32>
    %72 = tpu.matmul %71, %45, %cst_41 {dimension_numbers = #tpu.dot_dimension_numbers<[1], [0], [0], [1], [0, 0, 1, 1], [], []>} : vector<128x16xbf16>, vector<16x256xbf16>, vector<128x256xf32> -> vector<128x256xf32>
    %73 = vector.broadcast %5 : vector<128x1xf32> to vector<128x256xf32>
    %74 = arith.addf %72, %73 : vector<128x256xf32>
    %c1_42 = arith.constant 1 : index
    %c0_43 = arith.constant 0 : index
    %c0_44 = arith.constant 0 : index
    %75 = vector.load %arg9[%c1_42, %c0_43, %c0_44] : memref<2x128x256xf32, #tpu.memory_space<vmem>>, vector<1x128x256xf32>
    %76 = vector.shape_cast %75 : vector<1x128x256xf32> to vector<128x256xf32>
    %77 = vector.shape_cast %74 : vector<128x256xf32> to vector<1x128x256xf32>
    tpu.vector_store %arg9[%c1_42, %c0_43, %c0_44], %77 {strides = array<i32>} : memref<2x128x256xf32, #tpu.memory_space<vmem>>, vector<1x128x256xf32>,
    return
  }
  func.func @transform_0(%arg0: i32) -> (i32, i32, i32) {
    %c0_i32 = arith.constant 0 : i32
    %c0_i32_0 = arith.constant 0 : i32
    %c0_i32_1 = arith.constant 0 : i32
    return %arg0, %c0_i32, %c0_i32_0 : i32, i32, i32
  }
  func.func @transform_1(%arg0: i32) -> (i32, i32, i32) {
    %c0_i32 = arith.constant 0 : i32
    %c0_i32_0 = arith.constant 0 : i32
    %c0_i32_1 = arith.constant 0 : i32
    return %arg0, %c0_i32, %c0_i32_0 : i32, i32, i32
  }
  func.func @transform_2(%arg0: i32) -> (i32, i32) {
    %c0_i32 = arith.constant 0 : i32
    %c0_i32_0 = arith.constant 0 : i32
    %c0_i32_1 = arith.constant 0 : i32
    return %c0_i32, %c0_i32_0 : i32, i32
  }
  func.func @transform_3(%arg0: i32) -> (i32, i32) {
    %c0_i32 = arith.constant 0 : i32
    %c0_i32_0 = arith.constant 0 : i32
    %c0_i32_1 = arith.constant 0 : i32
    return %c0_i32, %c0_i32_0 : i32, i32
  }
  func.func @transform_4(%arg0: i32) -> (i32, i32) {
    %c0_i32 = arith.constant 0 : i32
    %c0_i32_0 = arith.constant 0 : i32
    %c0_i32_1 = arith.constant 0 : i32
    return %c0_i32, %c0_i32_0 : i32, i32
  }
  func.func @transform_5(%arg0: i32) -> (i32, i32) {
    %c0_i32 = arith.constant 0 : i32
    %c0_i32_0 = arith.constant 0 : i32
    %c0_i32_1 = arith.constant 0 : i32
    return %c0_i32, %c0_i32_0 : i32, i32
  }
  func.func @transform_6(%arg0: i32) -> (i32, i32) {
    %c0_i32 = arith.constant 0 : i32
    %c0_i32_0 = arith.constant 0 : i32
    %c0_i32_1 = arith.constant 0 : i32
    return %c0_i32, %c0_i32_0 : i32, i32
  }
  func.func @transform_7(%arg0: i32) -> (i32, i32) {
    %c0_i32 = arith.constant 0 : i32
    %c0_i32_0 = arith.constant 0 : i32
    %c0_i32_1 = arith.constant 0 : i32
    return %c0_i32, %c0_i32_0 : i32, i32
  }
  func.func @transform_8(%arg0: i32) -> (i32, i32, i32) {
    %c0_i32 = arith.constant 0 : i32
    %c0_i32_0 = arith.constant 0 : i32
    %c0_i32_1 = arith.constant 0 : i32
    return %arg0, %c0_i32, %c0_i32_0 : i32, i32, i32
  }
}

</mosaic_0001>

<bundles_post_ra>
// kernel: tpu_custom_call.1
= control target key start
LH: loop header
LB: loop body
LE: loop exit
PB: predicated region body
PF: predicated region fallthrough
CT: control target
= control target key end

     0   :  { %s2102_s0 = inlined_call_operand.vmem [shape: bf16[2,16,64], index: 0, kind: input, shape index: {}]   ;;  %s2103_s1 = inlined_call_operand.vmem [shape: bf16[2,16,256], index: 1, kind: input, shape index: {}]   ;;  %s2104_s2 = inlined_call_operand.vmem [shape: bf16[64,64], index: 2, kind: input, shape index: {}]   ;;  %s2105_s3 = inlined_call_operand.vmem [shape: f32[1,64], index: 3, kind: input, shape index: {}]   ;;  %s2106_s4 = inlined_call_operand.vmem [shape: bf16[64,64], index: 4, kind: input, shape index: {}]   ;;  %s2107_s5 = inlined_call_operand.vmem [shape: f32[1,64], index: 5, kind: input, shape index: {}]   ;;  %s2108_s6 = inlined_call_operand.vmem [shape: bf16[128,64], index: 6, kind: input, shape index: {}]   ;;  %s2109_s7 = inlined_call_operand.vmem [shape: f32[128,1], index: 7, kind: input, shape index: {}]   ;;  %s2110_s8 = inlined_call_operand.hbm [shape: f32[2,128,256], index: 8, kind: output, shape index: {}]  }
   0x1   :  { %v1619_v0 = vld [vmem:[%s2103_s1] sm:$0xff]  ;;  %v1624_v1 = vld [vmem:[%s2103_s1 + $0x8] sm:$0xff] }
   0x2   :  { %v85_v2 = vunpack.c.l.bf16 %v1619_v0  ;;  %v86_v3 = vunpack.c.h.bf16 %v1619_v0  ;;  %v87_v4 = vunpack.c.l.bf16 %v1624_v1  ;;  %v88_v5 = vunpack.c.h.bf16 %v1624_v1 }
   0x4   :  { %v89_v6 = vadd.f32 %v86_v3, %v85_v2  ;;  %v92_v7 = vadd.f32 %v88_v5, %v87_v4 }
   0x6   :  { %90 = vadd.xlane.f32.xlu0 %v89_v6 }
   0x7   :  { %13 = vsyncpa [#allocation3], 0  ;;  %v1633_v8 = vld [vmem:[%s2102_s0] sm:$0xff]   ;;  %v1565_v9 = vmov 0.0   ;;  %vm1566_vm0 = vmmov 0   ;;  %vm118_vm1 = vcmask 130048   ;;  %v323_v57 = vlaneseq }
   0x8   :  { %1415 = vmatprep.subr.bf16.mxu0 %v1565_v9  ;;  %1417 = vmatprep.mubr.msk.bf16.mxu0 %vm1566_vm0, %v1565_v9  ;;  %v1643_v13 = vld [vmem:[%s2104_s2 + $0x18] sm:$0xff]   ;;  %v1650_v15 = vld [vmem:[%s2104_s2 + $0x10] sm:$0xff]   ;;  %v1659_v16 = vld [vmem:[%s2104_s2 + $0x8] sm:$0xff]   ;;  %vm188_vm2 = vcmask 523264  }
   0x9   :  { %1416 = vmatpush3.bf16.msra.mxu0 %v1633_v8  ;;  %v1667_v17 = vld [vmem:[%s2104_s2] sm:$0xff]   ;;  %1511 = vmatprep.subr.msk.bf16.mxu1 %vm188_vm2, %v1633_v8  ;;  %v1676_v21 = vld [vmem:[%s2106_s4 + $0x18] sm:$0xff]   ;;  %v1683_v25 = vld [vmem:[%s2106_s4 + $0x10] sm:$0xff]   ;;  %v376_v47 = vsel %vm188_vm2, %v1633_v8, 0  ;;  %v1733_v58 = vshrl.u32 %v323_v57, 7 }
   0xa   :  { %93 = vadd.xlane.f32.xlu0 %v92_v7  ;;  %1421 = vmatprep.subr.bf16.mxu0 %v1565_v9  ;;  %v1693_v26 = vld [vmem:[%s2106_s4 + $0x8] sm:$0xff]   ;;  %v1700_v27 = vld [vmem:[%s2106_s4] sm:$0xff]   ;;  %v1706_v28 = vld [vmem:[%s2103_s1 + $0x18] sm:$0xff] }
   0xb   :  { %v1711_v29 = vld [vmem:[%s2103_s1 + $0x10] sm:$0xff]  ;;  %v750_v30 = vunpack.c.l.bf16 %v1706_v28  ;;  %v751_v31 = vunpack.c.h.bf16 %v1706_v28  ;;  %v1720_v36 = vld [vmem:[%s2105_s3] sm:$0x1]  ;;  %1446 = vmatpush3.bf16.xpose.msra.mxu1 %v376_v47  ;;  %v1743_v60 = vld [vmem:[%s2108_s6 + $0x8] sm:$0xff]   ;;  %v325_v61 = vsub.s32 0, %v1733_v58 }
   0xc   :  { %v748_v32 = vunpack.c.l.bf16 %v1711_v29  ;;  %v749_v33 = vunpack.c.h.bf16 %v1711_v29  ;;  %1463 = vmatprep.subr.bf16.mxu1 %v1565_v9  ;;  %v1730_v48 = vld [vmem:[%s2107_s5] sm:$0x1]  ;;  %v1749_v62 = vld [vmem:[%s2108_s6 + $0x10] sm:$0xff]   ;;  %v1340_v3 = vunpack.c.l.bf16 %v1743_v60  ;;  %v1341_v4 = vunpack.c.h.bf16 %v1743_v60 }
   0xd   :  { %v755_v34 = vadd.f32 %v751_v31, %v750_v30  ;;  %v1738_v59 = vld [vmem:[%s2108_s6] sm:$0xff]   ;;  %v1344_v6 = vunpack.c.l.bf16 %v1749_v62  ;;  %v1345_v7 = vunpack.c.h.bf16 %v1749_v62  ;;  %v1784_v30 = vld [vmem:[%s2102_s0 + $0x8] sm:$0xff]  }
   0xe   :  { %v752_v35 = vadd.f32 %v749_v33, %v748_v32  ;;  %v1336_v63 = vunpack.c.l.bf16 %v1738_v59  ;;  %v1337_v2 = vunpack.c.h.bf16 %v1738_v59 }
   0xf   :  { %756 = vadd.xlane.f32.xlu0 %v755_v34 }
  0x8f   :  { %v91_v10 = vpop.xlane.xlu0 %90 }
  0x93   :  { %v94_v11 = vpop.xlane.xlu0 %93 }
  0x94   :  { %v95_v12 = vpack.c.bf16 %v94_v11, %v91_v10 }
  0x96   :  { %96 = vxpose.xlu1.c.b16.start.end [1/1] (short) (narrow) %v95_v12, 16 }
  0x98   :  { %v757_v45 = vpop.xlane.xlu0 %756 }
  0xa3   :  { %753 = vadd.xlane.f32.xlu1 %v752_v35 }
  0xf8   :  { %v104_v14 = vpop.trf.xlu1 }
  0xf9   :  { %1418 = vmatmul.mubr.msk.bf16.vlgmr.msra.gmra.mxu0 %vm118_vm1, %v104_v14 }
  0xfa   :  { %1422 = vmatpush3.bf16.msra.mxu0 %v1643_v13  ;;  %1429 = vmatprep.mubr.msk.bf16.mxu0 %vm1566_vm0, %v1565_v9 }
  0xfb   :  { %1423 = vmatprep.subr.bf16.mxu0 %v1565_v9 }
  0xfe   :  { %1424 = vmatpush3.bf16.msra.mxu0 %v1650_v15 }
  0xff   :  { %1425 = vmatprep.subr.bf16.mxu0 %v1565_v9 }
 0x102   :  { %1426 = vmatpush3.bf16.msra.mxu0 %v1659_v16 }
 0x103   :  { %1427 = vmatprep.subr.bf16.mxu0 %v1565_v9 }
 0x106   :  { %1428 = vmatpush3.bf16.msra.mxu0 %v1667_v17 }
 0x107   :  { %1433 = vmatprep.subr.bf16.mxu0 %v1565_v9 }
 0x12c   :  { %v754_v44 = vpop.xlane.xlu1 %753 }
 0x12d   :  { %v758_v46 = vpack.c.bf16 %v757_v45, %v754_v44 }
 0x12f   :  { %759 = vxpose.xlu0.c.b16.start.end [1/1] (short) (narrow) %v758_v46, 16 }
 0x1b9   :  { %v156_v18 = vpop.f32.mrf.mxu0 }
 0x1ba   :  { %v162_v19 = vmul.f32 0.00390625, %v156_v18  ;;  %v1770_v18 = vld [vmem:[%s2108_s6 + $0x18] sm:$0xff]  }
 0x1bb   :  { %v1419_v20 = vpop.f32.mrf.mxu0  ;;  %v1348_v31 = vunpack.c.l.bf16 %v1770_v18  ;;  %v1349_v32 = vunpack.c.h.bf16 %v1770_v18 }
 0x1bc   :  { %v163_v22 = vpack.c.bf16 %v162_v19, %v162_v19 }
 0x1bd   :  { %v159_v23 = vpop.f32.mrf.mxu0 }
 0x1be   :  { %1430 = vmatmul.mubr.msk.bf16.vlgmr.msra.gmra.mxu0 %vm188_vm2, %v163_v22  ;;  %v1779_v22 = vld [vmem:[%s2108_s6 + $0x20] sm:$0xff]  }
 0x1bf   :  { %v1420_v24 = vpop.f32.mrf.mxu0  ;;  %1434 = vmatpush3.bf16.msra.mxu0 %v1676_v21  ;;  %1441 = vmatprep.mubr.msk.bf16.mxu0 %vm1566_vm0, %v1565_v9  ;;  %v1352_v34 = vunpack.c.l.bf16 %v1779_v22  ;;  %v1353_v35 = vunpack.c.h.bf16 %v1779_v22 }
 0x1c0   :  { %1435 = vmatprep.subr.bf16.mxu0 %v1565_v9 }
 0x1c3   :  { %1436 = vmatpush3.bf16.msra.mxu0 %v1683_v25 }
 0x1c4   :  { %1437 = vmatprep.subr.bf16.mxu0 %v1565_v9 }
 0x1c7   :  { %1438 = vmatpush3.bf16.msra.mxu0 %v1693_v26 }
 0x1c8   :  { %1439 = vmatprep.subr.bf16.mxu0 %v1565_v9 }
 0x1cb   :  { %1440 = vmatpush3.bf16.msra.mxu0 %v1700_v27 }
 0x27e   :  { %v226_v37 = vpop.f32.mrf.mxu0 }
 0x27f   :  { %v227_v38 = vadd.f32 %v226_v37, %v1720_v36 }
 0x280   :  { %v1431_v39 = vpop.f32.mrf.mxu0 }
 0x281   :  { %v232_v40 = vmax.f32 %v227_v38, 0.0 }
 0x282   :  { %v229_v41 = vpop.f32.mrf.mxu0 }
 0x283   :  { %v233_v42 = vpack.c.bf16 %v232_v40, %v232_v40  ;;  %v1806_v41 = vld [vmem:[%s2108_s6 + $0x28] sm:$0xff]  }
 0x284   :  { %v1432_v43 = vpop.f32.mrf.mxu0  ;;  %v1356_v44 = vunpack.c.l.bf16 %v1806_v41  ;;  %v1357_v45 = vunpack.c.h.bf16 %v1806_v41 }
 0x285   :  { %1442 = vmatmul.mubr.msk.bf16.vlgmr.msra.gmra.mxu0 %vm188_vm2, %v233_v42  ;;  %v1811_v42 = vld [vmem:[%s2108_s6 + $0x30] sm:$0xff]  }
 0x286   :  { %v1360_v47 = vunpack.c.l.bf16 %v1811_v42 }
 0x345   :  { %v295_v49 = vpop.f32.mrf.mxu0 }
 0x346   :  { %v296_v50 = vadd.f32 %v295_v49, %v1730_v48  ;;  %v1361_v49 = vunpack.c.h.bf16 %v1811_v42  ;;  %v1324_v42 = vcombine.low %v1711_v29, %v1706_v28 }
 0x347   :  { %v1443_v51 = vpop.f32.mrf.mxu0 }
 0x348   :  { %v1288_v52 = vmul.f32 -1.442695, %v296_v50 }
 0x349   :  { %v298_v53 = vpop.f32.mrf.mxu0 }
 0x34a   :  { %1535 = vpow2.f32 %v1288_v52 }
 0x34b   :  { %v1444_v54 = vpop.f32.mrf.mxu0 }
 0x34c   :  { %v1830_v54 = vld [vmem:[%s2108_s6 + $0x38] sm:$0xff]  }
 0x34d   :  { %v1365_v57 = vunpack.c.h.bf16 %v1830_v54 }
 0x357   :  { %v1536_v55 = vpop.eup %1535 }
 0x358   :  { %v304_v56 = vadd.f32 1.0, %v1536_v55 }
 0x35a   :  { %1537 = vrcp.f32 %v304_v56  ;;  %v1364_v56 = vunpack.c.l.bf16 %v1830_v54 }
 0x367   :  { %v1538_v5 = vpop.eup %1537 }
 0x368   :  { %v326_v8 = vrot.slane %v1538_v5, %v325_v61 }
 0x36a   :  { %v327_v10 = vmul.f32 %v1336_v63, %v326_v8  ;;  %v328_v11 = vmul.f32 %v1337_v2, %v326_v8  ;;  %v329_v12 = vmul.f32 %v1340_v3, %v326_v8  ;;  %v330_v14 = vmul.f32 %v1341_v4, %v326_v8 }
 0x36b   :  { %v331_v19 = vmul.f32 %v1344_v6, %v326_v8  ;;  %v332_v20 = vmul.f32 %v1345_v7, %v326_v8  ;;  %v333_v37 = vmul.f32 %v1348_v31, %v326_v8  ;;  %v334_v38 = vmul.f32 %v1349_v32, %v326_v8 }
 0x36c   :  { %v343_v23 = vpack.c.bf16 %v328_v11, %v327_v10  ;;  %v344_v24 = vpack.c.bf16 %v330_v14, %v329_v12  ;;  %v335_v39 = vmul.f32 %v1352_v34, %v326_v8  ;;  %v336_v40 = vmul.f32 %v1353_v35, %v326_v8  ;;  %v767_v14 = vpop.trf.xlu0 }
 0x36d   :  { %v345_v33 = vpack.c.bf16 %v332_v20, %v331_v19  ;;  %v346_v43 = vpack.c.bf16 %v334_v38, %v333_v37  ;;  %v337_v50 = vmul.f32 %v1356_v44, %v326_v8  ;;  %v338_v51 = vmul.f32 %v1357_v45, %v326_v8  ;;  %v77_v20 = vld [vmem:[%s2109_s7 + $0x60] sm:$0xff]  ;;  %v70_v37 = vld [vmem:[%s2109_s7 + $0x28] sm:$0xff]  ;;  %v71_v38 = vld [vmem:[%s2109_s7 + $0x30] sm:$0xff] }
 0x36e   :  { %1447 = vmatprep.mubr.msk.bf16.mxu1 %vm188_vm2, %v343_v23  ;;  %v347_v46 = vpack.c.bf16 %v336_v40, %v335_v39  ;;  %v339_v52 = vmul.f32 %v1360_v47, %v326_v8  ;;  %v340_v53 = vmul.f32 %v1361_v49, %v326_v8  ;;  %v341_v10 = vmul.f32 %v1364_v56, %v326_v8  ;;  %v68_v23 = vld [vmem:[%s2109_s7 + $0x18] sm:$0xff]  ;;  %v73_v39 = vld [vmem:[%s2109_s7 + $0x40] sm:$0xff]  ;;  %v74_v40 = vld [vmem:[%s2109_s7 + $0x48] sm:$0xff] }
 0x36f   :  { %1448 = vmatmul.mubr.msk.bf16.vlgmr.msra.gmra.mxu1 %vm188_vm2, %v344_v24  ;;  %v348_v55 = vpack.c.bf16 %v338_v51, %v337_v50  ;;  %v342_v11 = vmul.f32 %v1365_v57, %v326_v8  ;;  %v1297_v8 = vcombine.low %v1619_v0, %v1624_v1  ;;  %v1567_v19 = vmov 0   ;;  %v79_v24 = vld [vmem:[%s2109_s7 + $0x70] sm:$0xff]  ;;  %v80_v50 = vld [vmem:[%s2109_s7 + $0x78] sm:$0xff] }
 0x370   :  { %1464 = vmatpush3.bf16.msra.mxu1 %v1784_v30  ;;  %1451 = vmatprep.mubr.msk.bf16.mxu1 %vm188_vm2, %v345_v33  ;;  %v349_v5 = vpack.c.bf16 %v340_v53, %v339_v52  ;;  %v69_v33 = vld [vmem:[%s2109_s7 + $0x20] sm:$0xff] }
 0x371   :  { %1469 = vmatprep.subr.bf16.mxu1 %v1565_v9  ;;  %v350_v12 = vpack.c.bf16 %v342_v11, %v341_v10  ;;  %629 = vmatprep.mubr.bf16.mxu0 %v1567_v19 }
 0x372   :  { %1519 = vset.pattern.permute.xlu1 %v1567_v19  ;;  %1520 = vset.pattern.permute.xlu0 %v1567_v19 }
 0x377   :  { %1452 = vmatmul.mubr.msk.bf16.gmra.mxu1 %vm188_vm2, %v346_v43  ;;  %v76_v43 = vld [vmem:[%s2109_s7 + $0x58] sm:$0xff] }
 0x378   :  { %1455 = vmatprep.mubr.msk.bf16.mxu1 %vm188_vm2, %v347_v46  ;;  %v78_v46 = vld [vmem:[%s2109_s7 + $0x68] sm:$0xff] }
 0x37f   :  { %1456 = vmatmul.mubr.msk.bf16.gmra.mxu1 %vm188_vm2, %v348_v55 }
 0x380   :  { %1459 = vmatprep.mubr.msk.bf16.mxu1 %vm188_vm2, %v349_v5 }
 0x387   :  { %1460 = vmatmul.mubr.msk.bf16.gmra.mxu1 %vm188_vm2, %v350_v12 }
 0x388   :  { %1465 = vmatprep.mubr.msk.bf16.mxu1 %vm1566_vm0, %v1565_v9 }
 0x38f   :  { %1466 = vmatmul.mubr.msk.bf16.vlgmr.msra.gmra.mxu1 %vm118_vm1, %v767_v14 }
 0x390   :  { %1470 = vmatpush3.bf16.msra.mxu1 %v1643_v13  ;;  %1477 = vmatprep.mubr.msk.bf16.mxu1 %vm1566_vm0, %v1565_v9  ;;  %v1298_v13 = vcombine.high %v1619_v0, %v1624_v1  ;;  %v66_v0 = vld [vmem:[%s2109_s7 + $0x8] sm:$0xff]  ;;  %v72_v1 = vld [vmem:[%s2109_s7 + $0x38] sm:$0xff] }
 0x391   :  { %1471 = vmatprep.subr.bf16.mxu1 %v1565_v9  ;;  %520 = vperm.xlu0 %1520, %v72_v1  }
 0x392   :  { %611 = vmatprep.subr.bf16.mxu0 %v1298_v13 }
 0x393   :  { %612 = vmatpush1.bf16.msra.mxu0 %v1297_v8 }
 0x394   :  { %1472 = vmatpush3.bf16.msra.mxu1 %v1650_v15  ;;  %1512 = vmatprep.subr.msk.bf16.mxu0 %vm188_vm2, %v1784_v30  ;;  %v65_v15 = vld [vmem:[%s2109_s7] sm:$0xff] }
 0x395   :  { %1473 = vmatprep.subr.bf16.mxu1 %v1565_v9  ;;  %485 = vperm.xlu1 %1519, %v65_v15  }
 0x398   :  { %1474 = vmatpush3.bf16.msra.mxu1 %v1659_v16  ;;  %v75_v16 = vld [vmem:[%s2109_s7 + $0x50] sm:$0xff] }
 0x399   :  { %1475 = vmatprep.subr.bf16.mxu1 %v1565_v9  ;;  %490 = vperm.xlu1 %1519, %v66_v0  }
 0x39a   :  { %535 = vperm.xlu0 %1520, %v75_v16  }
 0x39c   :  { %1476 = vmatpush3.bf16.msra.mxu1 %v1667_v17  ;;  %v67_v17 = vld [vmem:[%s2109_s7 + $0x10] sm:$0xff]  ;;  %s1568_s7 = smov [#allocation2]  }
 0x39d   :  { %1481 = vmatprep.subr.bf16.mxu1 %v1565_v9  ;;  %495 = vperm.xlu1 %1519, %v67_v17   ;;  %s1265_s26 = sshll.u32 %s1568_s7, 4  ;;  %s1266_s26 = int_to_ptr.vmem [resolvable:$true] %s1265_s26 }
 0x39e   :  { %545 = vperm.xlu0 %1520, %v77_v20   ;;  %s1543_s27 = scalar_lea.vmem %s1266_s26, 8192  ;;  %p1548_p1 = scmp.lt.s32.totalorder %s1266_s26, %s1266_s26 }
 0x39f   :  { %p1544_p0 = scmp.ne.s32.totalorder %s1266_s26, %s1543_s27  ;;  %p1549_p2 = scmp.lt.s32.totalorder %s1543_s27, %s1543_s27 }
 0x3a1   :  { %500 = vperm.xlu1 %1519, %v68_v23   ;;  %p1550_p3 = por %p1549_p2, %p1548_p1 }
 0x3a2   :  { %555 = vperm.xlu0 %1520, %v79_v24  }
 0x3a3   :  { %p1551_p4 = pnand %p1550_p3, %p1544_p0 }
 0x3a5   :  { %505 = vperm.xlu1 %1519, %v69_v33  }
 0x3a9   :  { %510 = vperm.xlu1 %1519, %v70_v37  }
 0x3ad   :  { %515 = vperm.xlu1 %1519, %v71_v38  }
 0x3b1   :  { %525 = vperm.xlu1 %1519, %v73_v39  }
 0x3b5   :  { %530 = vperm.xlu1 %1519, %v74_v40  }
 0x3b9   :  { %540 = vperm.xlu1 %1519, %v76_v43  }
 0x3bd   :  { %550 = vperm.xlu1 %1519, %v78_v46  }
 0x3c1   :  { %560 = vperm.xlu1 %1519, %v80_v50  }
 0x42f   :  { %v1449_v51 = vpop.f32.mrf.mxu1 }
 0x431   :  { %v412_v52 = vpop.f32.mrf.mxu1 }
 0x433   :  { %v1450_v53 = vpop.f32.mrf.mxu1 }
 0x434   :  { %v476_v13 = vpack.c.bf16 %v1450_v53, %v1449_v51 }
 0x435   :  { %v415_v55 = vpop.f32.mrf.mxu1 }
 0x436   :  { %v475_v5 = vpack.c.bf16 %v415_v55, %v412_v52 }
 0x437   :  { %v1453_v10 = vpop.f32.mrf.mxu1 }
 0x438   :  { %1299 = vmatmul.mubr.msk.bf16.vlgmr.msra.gmra.mxu0 %vm118_vm1, %v475_v5 }
 0x439   :  { %v428_v11 = vpop.f32.mrf.mxu1  ;;  %639 = vmatprep.mubr.bf16.mxu0 %v1567_v19 }
 0x43b   :  { %v1454_v12 = vpop.f32.mrf.mxu1 }
 0x43c   :  { %v478_v33 = vpack.c.bf16 %v1454_v12, %v1453_v10 }
 0x43d   :  { %v431_v14 = vpop.f32.mrf.mxu1 }
 0x43e   :  { %v477_v16 = vpack.c.bf16 %v431_v14, %v428_v11 }
 0x43f   :  { %v1457_v8 = vpop.f32.mrf.mxu1 }
 0x440   :  { %1300 = vmatmul.mubr.msk.bf16.gmra.mxu0 %vm118_vm1, %v476_v13 }
 0x441   :  { %v444_v15 = vpop.f32.mrf.mxu1  ;;  %649 = vmatprep.mubr.bf16.mxu0 %v1567_v19 }
 0x443   :  { %v1458_v0 = vpop.f32.mrf.mxu1 }
 0x444   :  { %v480_v51 = vpack.c.bf16 %v1458_v0, %v1457_v8 }
 0x445   :  { %v447_v1 = vpop.f32.mrf.mxu1 }
 0x446   :  { %v479_v50 = vpack.c.bf16 %v447_v1, %v444_v15 }
 0x447   :  { %v1461_v17 = vpop.f32.mrf.mxu1 }
 0x448   :  { %1301 = vmatmul.mubr.msk.bf16.gmra.mxu0 %vm118_vm1, %v477_v16 }
 0x449   :  { %v460_v20 = vpop.f32.mrf.mxu1  ;;  %659 = vmatprep.mubr.bf16.mxu0 %v1567_v19 }
 0x44b   :  { %v1462_v23 = vpop.f32.mrf.mxu1 }
 0x44c   :  { %v482_v52 = vpack.c.bf16 %v1462_v23, %v1461_v17 }
 0x44d   :  { %v463_v24 = vpop.f32.mrf.mxu1 }
 0x44f   :  { %v818_v37 = vpop.f32.mrf.mxu1 }
 0x450   :  { %v824_v38 = vmul.f32 0.00390625, %v818_v37  ;;  %1302 = vmatmul.mubr.msk.bf16.gmra.mxu0 %vm118_vm1, %v478_v33 }
 0x451   :  { %v1467_v39 = vpop.f32.mrf.mxu1  ;;  %669 = vmatprep.mubr.bf16.mxu0 %v1567_v19 }
 0x452   :  { %v825_v40 = vpack.c.bf16 %v824_v38, %v824_v38 }
 0x453   :  { %v821_v43 = vpop.f32.mrf.mxu1 }
 0x454   :  { %1478 = vmatmul.mubr.msk.bf16.vlgmr.msra.gmra.mxu1 %vm188_vm2, %v825_v40 }
 0x455   :  { %v1468_v46 = vpop.f32.mrf.mxu1  ;;  %1482 = vmatpush3.bf16.msra.mxu1 %v1676_v21  ;;  %1489 = vmatprep.mubr.msk.bf16.mxu1 %vm1566_vm0, %v1565_v9  ;;  %v481_v21 = vpack.c.bf16 %v463_v24, %v460_v20 }
 0x456   :  { %1483 = vmatprep.subr.bf16.mxu1 %v1565_v9 }
 0x458   :  { %1303 = vmatmul.mubr.msk.bf16.gmra.mxu0 %vm118_vm1, %v479_v50 }
 0x459   :  { %679 = vmatprep.mubr.bf16.mxu0 %v1567_v19  ;;  %1484 = vmatpush3.bf16.msra.mxu1 %v1683_v25  ;;  %v973_v25 = vsel %vm188_vm2, %v1784_v30, 0 }
 0x45a   :  { %1485 = vmatprep.subr.bf16.mxu1 %v1565_v9  ;;  %1494 = vmatpush3.bf16.xpose.msra.mxu0 %v973_v25 }
 0x45d   :  { %1486 = vmatpush3.bf16.msra.mxu1 %v1693_v26  ;;  %v1938_v26 = vpop.permute.xlu1 %485 }
 0x45e   :  { %1487 = vmatprep.subr.bf16.mxu1 %v1565_v9 }
 0x460   :  { %1304 = vmatmul.mubr.msk.bf16.gmra.mxu0 %vm118_vm1, %v480_v51 }
 0x461   :  { %689 = vmatprep.mubr.bf16.mxu0 %v1567_v19  ;;  %1488 = vmatpush3.bf16.msra.mxu1 %v1700_v27  ;;  %v1940_v9 = vpop.permute.xlu1 %490 }
 0x465   :  { %v1942_v53 = vpop.permute.xlu1 %495 }
 0x468   :  { %1305 = vmatmul.mubr.msk.bf16.gmra.mxu0 %vm118_vm1, %v481_v21 }
 0x469   :  { %699 = vmatprep.mubr.bf16.mxu0 %v1567_v19  ;;  %v1946_v12 = vpop.permute.xlu1 %500 }
 0x46d   :  { %v1951_v1 = vpop.permute.xlu1 %505 }
 0x470   :  { %1306 = vmatmul.mubr.msk.bf16.gmra.mxu0 %vm118_vm1, %v482_v52 }
 0x471   :  { %v1956_v37 = vpop.permute.xlu1 %510 }
 0x475   :  { %v1961_v51 = vpop.permute.xlu1 %515 }
 0x4f8   :  { %v631_v55 = vpop.f32.mrf.mxu0 }
 0x4f9   :  { %v632_v27 = vadd.f32 %v631_v55, %v1938_v26 }
 0x4fa   :  { %v633_v5 = vpop.f32.mrf.mxu0 }
 0x4fb   :  { %710 = vst [vmem:[#allocation2] sm:$0xff] %v632_v27  ;;  %v634_v10 = vadd.f32 %v633_v5, %v1938_v26  ;;  %v1965_v27 = vpop.permute.xlu0 %520 }
 0x4fc   :  { %v635_v11 = vpop.f32.mrf.mxu0 }
 0x4fd   :  { %711 = vst [vmem:[#allocation2 + $0x8] sm:$0xff] %v634_v10  ;;  %v636_v30 = vadd.f32 %v635_v11, %v1940_v9  ;;  %v1968_v10 = vpop.permute.xlu1 %525 }
 0x4fe   :  { %v637_v14 = vpop.f32.mrf.mxu0 }
 0x4ff   :  { %712 = vst [vmem:[#allocation2 + $0x10] sm:$0xff] %v636_v30  ;;  %v638_v13 = vadd.f32 %v637_v14, %v1940_v9 }
 0x500   :  { %v641_v8 = vpop.f32.mrf.mxu0 }
 0x501   :  { %713 = vst [vmem:[#allocation2 + $0x18] sm:$0xff] %v638_v13  ;;  %v642_v15 = vadd.f32 %v641_v8, %v1942_v53 }
 0x502   :  { %v643_v0 = vpop.f32.mrf.mxu0 }
 0x503   :  { %714 = vst [vmem:[#allocation2 + $0x20] sm:$0xff] %v642_v15  ;;  %v644_v16 = vadd.f32 %v643_v0, %v1942_v53 }
 0x504   :  { %v645_v17 = vpop.f32.mrf.mxu0 }
 0x505   :  { %715 = vst [vmem:[#allocation2 + $0x28] sm:$0xff] %v644_v16  ;;  %v646_v20 = vadd.f32 %v645_v17, %v1946_v12 }
 0x506   :  { %v647_v23 = vpop.f32.mrf.mxu0 }
 0x507   :  { %716 = vst [vmem:[#allocation2 + $0x30] sm:$0xff] %v646_v20  ;;  %v648_v24 = vadd.f32 %v647_v23, %v1946_v12 }
 0x508   :  { %v651_v33 = vpop.f32.mrf.mxu0 }
 0x509   :  { %717 = vst [vmem:[#allocation2 + $0x38] sm:$0xff] %v648_v24  ;;  %v652_v38 = vadd.f32 %v651_v33, %v1951_v1  ;;  %v1974_v33 = vpop.permute.xlu1 %530 }
 0x50a   :  { %v653_v39 = vpop.f32.mrf.mxu0 }
 0x50b   :  { %718 = vst [vmem:[#allocation2 + $0x40] sm:$0xff] %v652_v38  ;;  %v654_v40 = vadd.f32 %v653_v39, %v1951_v1 }
 0x50c   :  { %v655_v43 = vpop.f32.mrf.mxu0 }
 0x50d   :  { %719 = vst [vmem:[#allocation2 + $0x48] sm:$0xff] %v654_v40  ;;  %v656_v46 = vadd.f32 %v655_v43, %v1956_v37 }
 0x50e   :  { %v657_v50 = vpop.f32.mrf.mxu0 }
 0x50f   :  { %720 = vst [vmem:[#allocation2 + $0x50] sm:$0xff] %v656_v46  ;;  %v658_v21 = vadd.f32 %v657_v50, %v1956_v37  ;;  %v1980_v50 = vpop.permute.xlu0 %535 }
 0x510   :  { %v661_v52 = vpop.f32.mrf.mxu0 }
 0x511   :  { %721 = vst [vmem:[#allocation2 + $0x58] sm:$0xff] %v658_v21  ;;  %v662_v25 = vadd.f32 %v661_v52, %v1961_v51 }
 0x512   :  { %v663_v55 = vpop.f32.mrf.mxu0 }
 0x513   :  { %722 = vst [vmem:[#allocation2 + $0x60] sm:$0xff] %v662_v25  ;;  %v664_v5 = vadd.f32 %v663_v55, %v1961_v51 }
 0x514   :  { %v665_v11 = vpop.f32.mrf.mxu0  ;;  %v863_v30 = vpop.f32.mrf.mxu1 }
 0x515   :  { %723 = vst [vmem:[#allocation2 + $0x68] sm:$0xff] %v664_v5  ;;  %v666_v14 = vadd.f32 %v665_v11, %v1965_v27  ;;  %v864_v13 = vadd.f32 %v863_v30, %v1720_v36  ;;  %v1984_v5 = vpop.permute.xlu1 %540 }
 0x516   :  { %v667_v8 = vpop.f32.mrf.mxu0  ;;  %v1479_v15 = vpop.f32.mrf.mxu1 }
 0x517   :  { %724 = vst [vmem:[#allocation2 + $0x70] sm:$0xff] %v666_v14  ;;  %v869_v0 = vmax.f32 %v864_v13, 0.0  ;;  %v668_v16 = vadd.f32 %v667_v8, %v1965_v27  ;;  %v1988_v8 = vpop.permute.xlu0 %545 }
 0x518   :  { %v671_v17 = vpop.f32.mrf.mxu0  ;;  %v866_v20 = vpop.f32.mrf.mxu1 }
 0x519   :  { %v870_v23 = vpack.c.bf16 %v869_v0, %v869_v0  ;;  %725 = vst [vmem:[#allocation2 + $0x78] sm:$0xff] %v668_v16  ;;  %v672_v24 = vadd.f32 %v671_v17, %v1968_v10  ;;  %v1992_v20 = vpop.permute.xlu1 %550 }
 0x51a   :  { %v673_v38 = vpop.f32.mrf.mxu0  ;;  %v1480_v39 = vpop.f32.mrf.mxu1 }
 0x51b   :  { %726 = vst [vmem:[#allocation2 + $0x80] sm:$0xff] %v672_v24  ;;  %v674_v40 = vadd.f32 %v673_v38, %v1968_v10  ;;  %1490 = vmatmul.mubr.msk.bf16.vlgmr.msra.gmra.mxu1 %vm188_vm2, %v870_v23 }
 0x51c   :  { %v675_v36 = vpop.f32.mrf.mxu0  ;;  %1146 = vmatprep.mubr.bf16.mxu1 %v1567_v19 }
 0x51d   :  { %727 = vst [vmem:[#allocation2 + $0x88] sm:$0xff] %v674_v40  ;;  %v676_v43 = vadd.f32 %v675_v36, %v1974_v33  ;;  %v1996_v40 = vpop.permute.xlu0 %555 }
 0x51e   :  { %v677_v46 = vpop.f32.mrf.mxu0 }
 0x51f   :  { %728 = vst [vmem:[#allocation2 + $0x90] sm:$0xff] %v676_v43  ;;  %v678_v21 = vadd.f32 %v677_v46, %v1974_v33 }
 0x520   :  { %v681_v52 = vpop.f32.mrf.mxu0 }
 0x521   :  { %729 = vst [vmem:[#allocation2 + $0x98] sm:$0xff] %v678_v21  ;;  %v682_v25 = vadd.f32 %v681_v52, %v1980_v50  ;;  %v2000_v52 = vpop.permute.xlu1 %560 }
 0x522   :  { %v683_v55 = vpop.f32.mrf.mxu0 }
 0x523   :  { %730 = vst [vmem:[#allocation2 + $0xa0] sm:$0xff] %v682_v25  ;;  %v684_v11 = vadd.f32 %v683_v55, %v1980_v50 }
 0x524   :  { %v685_v30 = vpop.f32.mrf.mxu0 }
 0x525   :  { %731 = vst [vmem:[#allocation2 + $0xa8] sm:$0xff] %v684_v11  ;;  %v686_v14 = vadd.f32 %v685_v30, %v1984_v5 }
 0x526   :  { %v687_v13 = vpop.f32.mrf.mxu0 }
 0x527   :  { %732 = vst [vmem:[#allocation2 + $0xb0] sm:$0xff] %v686_v14  ;;  %v688_v15 = vadd.f32 %v687_v13, %v1984_v5 }
 0x528   :  { %v691_v0 = vpop.f32.mrf.mxu0 }
 0x529   :  { %733 = vst [vmem:[#allocation2 + $0xb8] sm:$0xff] %v688_v15  ;;  %v692_v16 = vadd.f32 %v691_v0, %v1988_v8 }
 0x52a   :  { %v693_v17 = vpop.f32.mrf.mxu0 }
 0x52b   :  { %734 = vst [vmem:[#allocation2 + $0xc0] sm:$0xff] %v692_v16  ;;  %v694_v23 = vadd.f32 %v693_v17, %v1988_v8 }
 0x52c   :  { %v695_v24 = vpop.f32.mrf.mxu0 }
 0x52d   :  { %735 = vst [vmem:[#allocation2 + $0xc8] sm:$0xff] %v694_v23  ;;  %v696_v38 = vadd.f32 %v695_v24, %v1992_v20 }
 0x52e   :  { %v697_v39 = vpop.f32.mrf.mxu0 }
 0x52f   :  { %736 = vst [vmem:[#allocation2 + $0xd0] sm:$0xff] %v696_v38  ;;  %v698_v36 = vadd.f32 %v697_v39, %v1992_v20 }
 0x530   :  { %v701_v43 = vpop.f32.mrf.mxu0 }
 0x531   :  { %737 = vst [vmem:[#allocation2 + $0xd8] sm:$0xff] %v698_v36  ;;  %v702_v46 = vadd.f32 %v701_v43, %v1996_v40 }
 0x532   :  { %v703_v21 = vpop.f32.mrf.mxu0 }
 0x533   :  { %738 = vst [vmem:[#allocation2 + $0xe0] sm:$0xff] %v702_v46  ;;  %v704_v25 = vadd.f32 %v703_v21, %v1996_v40 }
 0x534   :  { %v705_v55 = vpop.f32.mrf.mxu0 }
 0x535   :  { %739 = vst [vmem:[#allocation2 + $0xe8] sm:$0xff] %v704_v25  ;;  %v706_v11 = vadd.f32 %v705_v55, %v2000_v52 }
 0x536   :  { %v707_v30 = vpop.f32.mrf.mxu0 }
 0x537   :  { %740 = vst [vmem:[#allocation2 + $0xf0] sm:$0xff] %v706_v11  ;;  %v708_v14 = vadd.f32 %v707_v30, %v2000_v52 }
 0x539   :  { %741 = vst [vmem:[#allocation2 + $0xf8] sm:$0xff] %v708_v14 }
 0x5db   :  { %v908_v13 = vpop.f32.mrf.mxu1 }
 0x5dc   :  { %v909_v15 = vadd.f32 %v908_v13, %v1730_v48 }
 0x5dd   :  { %v1491_v0 = vpop.f32.mrf.mxu1 }
 0x5de   :  { %v1315_v16 = vmul.f32 -1.442695, %v909_v15 }
 0x5df   :  { %v911_v17 = vpop.f32.mrf.mxu1 }
 0x5e0   :  { %1539 = vpow2.f32 %v1315_v16 }
 0x5e1   :  { %v1492_v23 = vpop.f32.mrf.mxu1 }
 0x5ed   :  { %v1540_v24 = vpop.eup %1539 }
 0x5ee   :  { %v917_v38 = vadd.f32 1.0, %v1540_v24 }
 0x5f0   :  { %1541 = vrcp.f32 %v917_v38 }
 0x5fd   :  { %v1542_v39 = vpop.eup %1541 }
 0x5fe   :  { %v923_v36 = vrot.slane %v1542_v39, %v325_v61 }
 0x600   :  { %v924_v43 = vmul.f32 %v1336_v63, %v923_v36  ;;  %v925_v46 = vmul.f32 %v1337_v2, %v923_v36  ;;  %v926_v48 = vmul.f32 %v1340_v3, %v923_v36  ;;  %v927_v21 = vmul.f32 %v1341_v4, %v923_v36 }
 0x601   :  { %v928_v25 = vmul.f32 %v1344_v6, %v923_v36  ;;  %v929_v55 = vmul.f32 %v1345_v7, %v923_v36  ;;  %v930_v59 = vmul.f32 %v1348_v31, %v923_v36  ;;  %v931_v60 = vmul.f32 %v1349_v32, %v923_v36 }
 0x602   :  { %v940_v58 = vpack.c.bf16 %v925_v46, %v924_v43  ;;  %v941_v61 = vpack.c.bf16 %v927_v21, %v926_v48  ;;  %v932_v2 = vmul.f32 %v1352_v34, %v923_v36  ;;  %v933_v62 = vmul.f32 %v1353_v35, %v923_v36 }
 0x603   :  { %v942_v63 = vpack.c.bf16 %v929_v55, %v928_v25  ;;  %v943_v3 = vpack.c.bf16 %v931_v60, %v930_v59  ;;  %v934_v6 = vmul.f32 %v1356_v44, %v923_v36  ;;  %v935_v7 = vmul.f32 %v1357_v45, %v923_v36 }
 0x604   :  { %1495 = vmatprep.mubr.msk.bf16.mxu0 %vm188_vm2, %v940_v58  ;;  %v944_v4 = vpack.c.bf16 %v933_v62, %v932_v2  ;;  %v936_v18 = vmul.f32 %v1360_v47, %v923_v36  ;;  %v937_v31 = vmul.f32 %v1361_v49, %v923_v36  ;;  %v938_v34 = vmul.f32 %v1364_v56, %v923_v36 }
 0x605   :  { %1496 = vmatmul.mubr.msk.bf16.vlgmr.msra.gmra.mxu0 %vm188_vm2, %v941_v61  ;;  %v945_v22 = vpack.c.bf16 %v935_v7, %v934_v6  ;;  %v939_v35 = vmul.f32 %v1365_v57, %v923_v36  ;;  %v1325_v44 = vcombine.high %v1711_v29, %v1706_v28 }
 0x606   :  { %1499 = vmatprep.mubr.msk.bf16.mxu0 %vm188_vm2, %v942_v63  ;;  %v946_v32 = vpack.c.bf16 %v937_v31, %v936_v18 }
 0x607   :  { %v947_v41 = vpack.c.bf16 %v939_v35, %v938_v34  ;;  %1128 = vmatprep.subr.bf16.mxu1 %v1325_v44 }
 0x608   :  { %1129 = vmatpush1.bf16.msra.mxu1 %v1324_v42 }
 0x60d   :  { %1500 = vmatmul.mubr.msk.bf16.gmra.mxu0 %vm188_vm2, %v943_v3 }
 0x60e   :  { %1503 = vmatprep.mubr.msk.bf16.mxu0 %vm188_vm2, %v944_v4 }
 0x615   :  { %1504 = vmatmul.mubr.msk.bf16.gmra.mxu0 %vm188_vm2, %v945_v22 }
 0x616   :  { %1507 = vmatprep.mubr.msk.bf16.mxu0 %vm188_vm2, %v946_v32 }
 0x61d   :  { %1508 = vmatmul.mubr.msk.bf16.gmra.mxu0 %vm188_vm2, %v947_v41 }
 0x6c5   :  { %v1497_v45 = vpop.f32.mrf.mxu0 }
 0x6c7   :  { %v1009_v47 = vpop.f32.mrf.mxu0 }
 0x6c9   :  { %v1498_v49 = vpop.f32.mrf.mxu0 }
 0x6ca   :  { %v1073_v57 = vpack.c.bf16 %v1498_v49, %v1497_v45 }
 0x6cb   :  { %v1012_v11 = vpop.f32.mrf.mxu0 }
 0x6cc   :  { %v1072_v30 = vpack.c.bf16 %v1012_v11, %v1009_v47 }
 0x6cd   :  { %v1501_v56 = vpop.f32.mrf.mxu0 }
 0x6ce   :  { %1326 = vmatmul.mubr.msk.bf16.vlgmr.msra.gmra.mxu1 %vm118_vm1, %v1072_v30 }
 0x6cf   :  { %1156 = vmatprep.mubr.bf16.mxu1 %v1567_v19  ;;  %v1025_v54 = vpop.f32.mrf.mxu0 }
 0x6d1   :  { %v1502_v14 = vpop.f32.mrf.mxu0 }
 0x6d2   :  { %v1075_v0 = vpack.c.bf16 %v1502_v14, %v1501_v56 }
 0x6d3   :  { %v1028_v28 = vpop.f32.mrf.mxu0 }
 0x6d4   :  { %v1074_v29 = vpack.c.bf16 %v1028_v28, %v1025_v54 }
 0x6d5   :  { %v1505_v13 = vpop.f32.mrf.mxu0 }
 0x6d6   :  { %1327 = vmatmul.mubr.msk.bf16.gmra.mxu1 %vm118_vm1, %v1073_v57 }
 0x6d7   :  { %1166 = vmatprep.mubr.bf16.mxu1 %v1567_v19  ;;  %v1041_v15 = vpop.f32.mrf.mxu0 }
 0x6d9   :  { %v1506_v16 = vpop.f32.mrf.mxu0 }
 0x6da   :  { %v1077_v39 = vpack.c.bf16 %v1506_v16, %v1505_v13 }
 0x6db   :  { %v1044_v17 = vpop.f32.mrf.mxu0 }
 0x6dc   :  { %v1076_v23 = vpack.c.bf16 %v1044_v17, %v1041_v15 }
 0x6dd   :  { %v1509_v24 = vpop.f32.mrf.mxu0 }
 0x6de   :  { %1328 = vmatmul.mubr.msk.bf16.gmra.mxu1 %vm118_vm1, %v1074_v29 }
 0x6df   :  { %1176 = vmatprep.mubr.bf16.mxu1 %v1567_v19  ;;  %v1057_v38 = vpop.f32.mrf.mxu0 }
 0x6e1   :  { %v1510_v36 = vpop.f32.mrf.mxu0 }
 0x6e2   :  { %v1079_v48 = vpack.c.bf16 %v1510_v36, %v1509_v24 }
 0x6e3   :  { %v1060_v43 = vpop.f32.mrf.mxu0 }
 0x6e4   :  { %v1078_v46 = vpack.c.bf16 %v1060_v43, %v1057_v38 }
 0x6e6   :  { %1329 = vmatmul.mubr.msk.bf16.gmra.mxu1 %vm118_vm1, %v1075_v0 }
 0x6e7   :  { %1186 = vmatprep.mubr.bf16.mxu1 %v1567_v19 }
 0x6ee   :  { %1330 = vmatmul.mubr.msk.bf16.gmra.mxu1 %vm118_vm1, %v1076_v23 }
 0x6ef   :  { %1196 = vmatprep.mubr.bf16.mxu1 %v1567_v19 }
 0x6f6   :  { %1331 = vmatmul.mubr.msk.bf16.gmra.mxu1 %vm118_vm1, %v1077_v39 }
 0x6f7   :  { %1206 = vmatprep.mubr.bf16.mxu1 %v1567_v19 }
 0x6fe   :  { %1332 = vmatmul.mubr.msk.bf16.gmra.mxu1 %vm118_vm1, %v1078_v46 }
 0x6ff   :  { %1216 = vmatprep.mubr.bf16.mxu1 %v1567_v19 }
 0x706   :  { %1333 = vmatmul.mubr.msk.bf16.gmra.mxu1 %vm118_vm1, %v1079_v48 }
 0x78e   :  { %v1148_v21 = vpop.f32.mrf.mxu1 }
 0x78f   :  { %v1149_v25 = vadd.f32 %v1148_v21, %v1938_v26 }
 0x790   :  { %v1150_v55 = vpop.f32.mrf.mxu1 }
 0x791   :  { %1228 = vst [vmem:[#allocation2 + $0x100] sm:$0xff] %v1149_v25  ;;  %v1151_v58 = vadd.f32 %v1150_v55, %v1938_v26 }
 0x792   :  { %v1152_v61 = vpop.f32.mrf.mxu1 }
 0x793   :  { %1229 = vst [vmem:[#allocation2 + $0x108] sm:$0xff] %v1151_v58  ;;  %v1153_v63 = vadd.f32 %v1152_v61, %v1940_v9 }
 0x794   :  { %v1154_v59 = vpop.f32.mrf.mxu1 }
 0x795   :  { %1230 = vst [vmem:[#allocation2 + $0x110] sm:$0xff] %v1153_v63  ;;  %v1155_v60 = vadd.f32 %v1154_v59, %v1940_v9 }
 0x796   :  { %v1158_v2 = vpop.f32.mrf.mxu1 }
 0x797   :  { %1231 = vst [vmem:[#allocation2 + $0x118] sm:$0xff] %v1155_v60  ;;  %v1159_v19 = vadd.f32 %v1158_v2, %v1942_v53 }
 0x798   :  { %v1160_v62 = vpop.f32.mrf.mxu1 }
 0x799   :  { %1232 = vst [vmem:[#allocation2 + $0x120] sm:$0xff] %v1159_v19  ;;  %v1161_v3 = vadd.f32 %v1160_v62, %v1942_v53 }
 0x79a   :  { %v1162_v4 = vpop.f32.mrf.mxu1 }
 0x79b   :  { %1233 = vst [vmem:[#allocation2 + $0x128] sm:$0xff] %v1161_v3  ;;  %v1163_v26 = vadd.f32 %v1162_v4, %v1946_v12 }
 0x79c   :  { %v1164_v6 = vpop.f32.mrf.mxu1 }
 0x79d   :  { %1234 = vst [vmem:[#allocation2 + $0x130] sm:$0xff] %v1163_v26  ;;  %v1165_v7 = vadd.f32 %v1164_v6, %v1946_v12 }
 0x79e   :  { %v1168_v18 = vpop.f32.mrf.mxu1 }
 0x79f   :  { %1235 = vst [vmem:[#allocation2 + $0x138] sm:$0xff] %v1165_v7  ;;  %v1169_v9 = vadd.f32 %v1168_v18, %v1951_v1 }
 0x7a0   :  { %v1170_v31 = vpop.f32.mrf.mxu1 }
 0x7a1   :  { %1236 = vst [vmem:[#allocation2 + $0x140] sm:$0xff] %v1169_v9  ;;  %v1171_v22 = vadd.f32 %v1170_v31, %v1951_v1 }
 0x7a2   :  { %v1172_v32 = vpop.f32.mrf.mxu1 }
 0x7a3   :  { %1237 = vst [vmem:[#allocation2 + $0x148] sm:$0xff] %v1171_v22  ;;  %v1173_v53 = vadd.f32 %v1172_v32, %v1956_v37 }
 0x7a4   :  { %v1174_v34 = vpop.f32.mrf.mxu1 }
 0x7a5   :  { %1238 = vst [vmem:[#allocation2 + $0x150] sm:$0xff] %v1173_v53  ;;  %v1175_v35 = vadd.f32 %v1174_v34, %v1956_v37 }
 0x7a6   :  { %v1178_v41 = vpop.f32.mrf.mxu1 }
 0x7a7   :  { %1239 = vst [vmem:[#allocation2 + $0x158] sm:$0xff] %v1175_v35  ;;  %v1179_v12 = vadd.f32 %v1178_v41, %v1961_v51 }
 0x7a8   :  { %v1180_v44 = vpop.f32.mrf.mxu1 }
 0x7a9   :  { %1240 = vst [vmem:[#allocation2 + $0x160] sm:$0xff] %v1179_v12  ;;  %v1181_v42 = vadd.f32 %v1180_v44, %v1961_v51 }
 0x7aa   :  { %v1182_v45 = vpop.f32.mrf.mxu1 }
 0x7ab   :  { %1241 = vst [vmem:[#allocation2 + $0x168] sm:$0xff] %v1181_v42  ;;  %v1183_v1 = vadd.f32 %v1182_v45, %v1965_v27 }
 0x7ac   :  { %v1184_v47 = vpop.f32.mrf.mxu1 }
 0x7ad   :  { %1242 = vst [vmem:[#allocation2 + $0x170] sm:$0xff] %v1183_v1  ;;  %v1185_v49 = vadd.f32 %v1184_v47, %v1965_v27 }
 0x7ae   :  { %v1188_v11 = vpop.f32.mrf.mxu1 }
 0x7af   :  { %1243 = vst [vmem:[#allocation2 + $0x178] sm:$0xff] %v1185_v49  ;;  %v1189_v37 = vadd.f32 %v1188_v11, %v1968_v10 }
 0x7b0   :  { %v1190_v30 = vpop.f32.mrf.mxu1 }
 0x7b1   :  { %1244 = vst [vmem:[#allocation2 + $0x180] sm:$0xff] %v1189_v37  ;;  %v1191_v56 = vadd.f32 %v1190_v30, %v1968_v10 }
 0x7b2   :  { %v1192_v54 = vpop.f32.mrf.mxu1 }
 0x7b3   :  { %1245 = vst [vmem:[#allocation2 + $0x188] sm:$0xff] %v1191_v56  ;;  %v1193_v51 = vadd.f32 %v1192_v54, %v1974_v33 }
 0x7b4   :  { %v1194_v57 = vpop.f32.mrf.mxu1 }
 0x7b5   :  { %1246 = vst [vmem:[#allocation2 + $0x190] sm:$0xff] %v1193_v51  ;;  %v1195_v14 = vadd.f32 %v1194_v57, %v1974_v33 }
 0x7b6   :  { %v1198_v28 = vpop.f32.mrf.mxu1 }
 0x7b7   :  { %1247 = vst [vmem:[#allocation2 + $0x198] sm:$0xff] %v1195_v14  ;;  %v1199_v27 = vadd.f32 %v1198_v28, %v1980_v50 }
 0x7b8   :  { %v1200_v29 = vpop.f32.mrf.mxu1 }
 0x7b9   :  { %1248 = vst [vmem:[#allocation2 + $0x1a0] sm:$0xff] %v1199_v27  ;;  %v1201_v13 = vadd.f32 %v1200_v29, %v1980_v50 }
 0x7ba   :  { %v1202_v15 = vpop.f32.mrf.mxu1 }
 0x7bb   :  { %1249 = vst [vmem:[#allocation2 + $0x1a8] sm:$0xff] %v1201_v13  ;;  %v1203_v10 = vadd.f32 %v1202_v15, %v1984_v5 }
 0x7bc   :  { %v1204_v0 = vpop.f32.mrf.mxu1 }
 0x7bd   :  { %1250 = vst [vmem:[#allocation2 + $0x1b0] sm:$0xff] %v1203_v10  ;;  %v1205_v16 = vadd.f32 %v1204_v0, %v1984_v5 }
 0x7be   :  { %v1208_v17 = vpop.f32.mrf.mxu1 }
 0x7bf   :  { %1251 = vst [vmem:[#allocation2 + $0x1b8] sm:$0xff] %v1205_v16  ;;  %v1209_v33 = vadd.f32 %v1208_v17, %v1988_v8 }
 0x7c0   :  { %v1210_v23 = vpop.f32.mrf.mxu1 }
 0x7c1   :  { %1252 = vst [vmem:[#allocation2 + $0x1c0] sm:$0xff] %v1209_v33  ;;  %v1211_v24 = vadd.f32 %v1210_v23, %v1988_v8 }
 0x7c2   :  { %v1212_v38 = vpop.f32.mrf.mxu1 }
 0x7c3   :  { %1253 = vst [vmem:[#allocation2 + $0x1c8] sm:$0xff] %v1211_v24  ;;  %v1213_v50 = vadd.f32 %v1212_v38, %v1992_v20 }
 0x7c4   :  { %v1214_v39 = vpop.f32.mrf.mxu1 }
 0x7c5   :  { %1254 = vst [vmem:[#allocation2 + $0x1d0] sm:$0xff] %v1213_v50  ;;  %v1215_v36 = vadd.f32 %v1214_v39, %v1992_v20 }
 0x7c6   :  { %v1218_v43 = vpop.f32.mrf.mxu1 }
 0x7c7   :  { %1255 = vst [vmem:[#allocation2 + $0x1d8] sm:$0xff] %v1215_v36  ;;  %v1219_v5 = vadd.f32 %v1218_v43, %v1996_v40 }
 0x7c8   :  { %v1220_v46 = vpop.f32.mrf.mxu1 }
 0x7c9   :  { %1256 = vst [vmem:[#allocation2 + $0x1e0] sm:$0xff] %v1219_v5  ;;  %v1221_v48 = vadd.f32 %v1220_v46, %v1996_v40 }
 0x7ca   :  { %v1222_v21 = vpop.f32.mrf.mxu1 }
 0x7cb   :  { %1257 = vst [vmem:[#allocation2 + $0x1e8] sm:$0xff] %v1221_v48  ;;  %v1223_v8 = vadd.f32 %v1222_v21, %v2000_v52 }
 0x7cc   :  { %v1224_v25 = vpop.f32.mrf.mxu1 }
 0x7cd   :  { %1258 = vst [vmem:[#allocation2 + $0x1f0] sm:$0xff] %v1223_v8  ;;  %v1225_v55 = vadd.f32 %v1224_v25, %v2000_v52 }
 0x7cf   :  { %1259 = vst [vmem:[#allocation2 + $0x1f8] sm:$0xff] %v1225_v55 }
 0x7d0   :  { %1554 = shalt.err (!%p1551_p4)
}
 0x7d1   :  { %s1569_s28 = smov 256   ;;  %s1570_s29 = smov 16  }
 0x7d2   :  { %1271 = dma.vmem_to_hbm [thread:$0]  %s1266_s26, 8192, %s2110_s8, [#allocation3], %s1569_s28, %s1569_s28, %s1570_s29  }
 0x7d3   :  { %1563 = dma.done.wait [#allocation3], 8192  }
 0x7d4   :  { %1564 = vsyncadd [#allocation3], 4294959104 }
 0x7d5   :  { %1275 = vsyncpa [#allocation3], 1 }

</bundles_post_ra>
